<compile_context>
chip_gen: v7x
topology: tpu7x:2x2x1
jax: 0.10.0
libtpu: 0.0.40
codegen_flags: <defaults>
</compile_context>

<pallas_src>
import jax
import jax.numpy as jnp
from jax.experimental import pallas as pl
from jax.experimental.pallas import tpu as pltpu


def _round_up(x: int, m: int) -> int:
    return (x + m - 1) // m * m


def generator_kernel(x_ref, w1_ref, b1_ref, w2_ref, b2_ref, w3_ref, b3_ref, o_ref):
    # Layer 1: Linear + ReLU  (bf16 MXU inputs, f32 accumulate)
    x = x_ref[...].astype(jnp.bfloat16)
    h1 = jnp.dot(x, w1_ref[...], preferred_element_type=jnp.float32)
    h1 = jnp.maximum(h1 + b1_ref[...], 0.0)
    # Layer 2: Linear + ReLU
    h2 = jnp.dot(h1.astype(jnp.bfloat16), w2_ref[...],
                 preferred_element_type=jnp.float32)
    h2 = jnp.maximum(h2 + b2_ref[...], 0.0)
    # Layer 3: Linear + Tanh
    h3 = jnp.dot(h2.astype(jnp.bfloat16), w3_ref[...],
                 preferred_element_type=jnp.float32)
    o_ref[...] = jnp.tanh(h3 + b3_ref[...])


def generator_forward(x, w1, b1, w2, b2, w3, b3, *, block_b: int = 256):
    """x: (B, input_size) f32; weights (in, out) f32; biases (1, out) f32 -> (B, 784) f32."""
    B, d_in = x.shape
    h1_dim = w1.shape[1]          # 150
    h2_dim = w2.shape[1]          # 300
    out_dim = w3.shape[1]         # 784

    # Lane-dense padded dims (multiples of 128).
    d_in_p = _round_up(d_in, 128)
    h1_p = _round_up(h1_dim, 128)
    h2_p = _round_up(h2_dim, 128)
    out_p = _round_up(out_dim, 128)

    # Batch tile: multiple of 8 sublanes, capped at block_b; pad B up to a tile multiple.
    tb = min(block_b, _round_up(B, 8))
    b_p = _round_up(B, tb)
    grid = (b_p // tb,)

    # Zero-pad everything (zero weight rows/cols and zero biases keep the math exact),
    # cast weights to bf16 (halves resident/streamed weight bytes; MXU-native input dtype).
    xp = jnp.pad(x, ((0, b_p - B), (0, d_in_p - d_in)))
    w1p = jnp.pad(w1, ((0, d_in_p - d_in), (0, h1_p - h1_dim))).astype(jnp.bfloat16)
    w2p = jnp.pad(w2, ((0, h1_p - h1_dim), (0, h2_p - h2_dim))).astype(jnp.bfloat16)
    w3p = jnp.pad(w3, ((0, h2_p - h2_dim), (0, out_p - out_dim))).astype(jnp.bfloat16)
    b1p = jnp.pad(b1, ((0, 0), (0, h1_p - h1_dim)))
    b2p = jnp.pad(b2, ((0, 0), (0, h2_p - h2_dim)))
    b3p = jnp.pad(b3, ((0, 0), (0, out_p - out_dim)))

    in_specs = [
        pl.BlockSpec((tb, d_in_p), lambda i: (i, 0)),      # x tile, streamed per grid step
        pl.BlockSpec((d_in_p, h1_p), lambda i: (0, 0)),    # weights/biases: resident
        pl.BlockSpec((1, h1_p), lambda i: (0, 0)),
        pl.BlockSpec((h1_p, h2_p), lambda i: (0, 0)),
        pl.BlockSpec((1, h2_p), lambda i: (0, 0)),
        pl.BlockSpec((h2_p, out_p), lambda i: (0, 0)),
        pl.BlockSpec((1, out_p), lambda i: (0, 0)),
    ]
    out_specs = pl.BlockSpec((tb, out_p), lambda i: (i, 0))

    out_padded = pl.pallas_call(
        generator_kernel,
        out_shape=jax.ShapeDtypeStruct((b_p, out_p), jnp.float32),
        grid=grid,
        in_specs=in_specs,
        out_specs=out_specs,
        compiler_params=pltpu.CompilerParams(
            dimension_semantics=("parallel",),   # batch axis: shards across TCs on v7x
        ),
    )(xp, w1p, b1p, w2p, b2p, w3p, b3p)

    return out_padded[:B, :out_dim]


def init_linear_params(key, fan_in, fan_out):
    """Deterministic init mimicking PyTorch's default uniform(-1/sqrt(fan_in), +1/sqrt(fan_in))."""
    kw, kb = jax.random.split(key)
    bound = 1.0 / jnp.sqrt(jnp.float32(fan_in))
    w = jax.random.uniform(kw, (fan_in, fan_out), jnp.float32, -bound, bound)
    b = jax.random.uniform(kb, (1, fan_out), jnp.float32, -bound, bound)
    return w, b


def reference_forward(x, w1, b1, w2, b2, w3, b3):
    """Plain-JAX reference using the same bf16 weight/activation quantization as the kernel."""
    bf = lambda a: a.astype(jnp.bfloat16)
    h1 = jnp.maximum(
        jnp.dot(bf(x), bf(w1), preferred_element_type=jnp.float32) + b1, 0.0)
    h2 = jnp.maximum(
        jnp.dot(bf(h1), bf(w2), preferred_element_type=jnp.float32) + b2, 0.0)
    return jnp.tanh(
        jnp.dot(bf(h2), bf(w3), preferred_element_type=jnp.float32) + b3)


if __name__ == "__main__":
    key = jax.random.PRNGKey(0)
    k_x, k1, k2, k3 = jax.random.split(key, 4)

    batch = 4
    input_size = 32  # latent noise dimension

    x = jax.random.normal(k_x, (batch, input_size), jnp.float32)
    w1, b1 = init_linear_params(k1, input_size, 150)
    w2, b2 = init_linear_params(k2, 150, 300)
    w3, b3 = init_linear_params(k3, 300, 784)

    out = generator_forward(x, w1, b1, w2, b2, w3, b3)
    out = jax.block_until_ready(out)

    ref = reference_forward(x, w1, b1, w2, b2, w3, b3)
    assert out.shape == (batch, 784)
    assert jnp.allclose(out, ref, atol=2e-2, rtol=2e-2), (
        f"max abs err = {jnp.max(jnp.abs(out - ref))}")

    print("KERNEL_OK")
</pallas_src>

<mosaic_0001>
module attributes {stable_mosaic.version = 11 : i64} {
  func.func @generator_kernel(%arg0: i32, %arg1: memref<8x128xf32, #tpu.memory_space<vmem>>, %arg2: memref<128x256xbf16, #tpu.memory_space<vmem>>, %arg3: memref<1x256xf32, #tpu.memory_space<vmem>>, %arg4: memref<256x384xbf16, #tpu.memory_space<vmem>>, %arg5: memref<1x384xf32, #tpu.memory_space<vmem>>, %arg6: memref<384x896xbf16, #tpu.memory_space<vmem>>, %arg7: memref<1x896xf32, #tpu.memory_space<vmem>>, %arg8: memref<8x896xf32, #tpu.memory_space<vmem>>) attributes {dimension_semantics = [#tpu.dimension_semantics<parallel>], iteration_bounds = array<i64: 1>, scalar_prefetch = 0 : i64, scratch_operands = 0 : i64, tpu.core_type = #tpu.core_type<tc>, window_params = [{transform_indices = @transform_0, window_bounds = array<i64: 8, 128>}, {pipeline_mode = #tpu.pipeline_mode<synchronous>, transform_indices = @transform_1, window_bounds = array<i64: 128, 256>}, {pipeline_mode = #tpu.pipeline_mode<synchronous>, transform_indices = @transform_2, window_bounds = array<i64: 1, 256>}, {pipeline_mode = #tpu.pipeline_mode<synchronous>, transform_indices = @transform_3, window_bounds = array<i64: 256, 384>}, {pipeline_mode = #tpu.pipeline_mode<synchronous>, transform_indices = @transform_4, window_bounds = array<i64: 1, 384>}, {pipeline_mode = #tpu.pipeline_mode<synchronous>, transform_indices = @transform_5, window_bounds = array<i64: 384, 896>}, {pipeline_mode = #tpu.pipeline_mode<synchronous>, transform_indices = @transform_6, window_bounds = array<i64: 1, 896>}, {transform_indices = @transform_7, window_bounds = array<i64: 8, 896>}]} {
    %c0 = arith.constant 0 : index
    %c0_0 = arith.constant 0 : index
    %0 = vector.load %arg1[%c0, %c0_0] : memref<8x128xf32, #tpu.memory_space<vmem>>, vector<8x128xf32>
    %1 = arith.truncf %0 : vector<8x128xf32> to vector<8x128xbf16>
    %c0_1 = arith.constant 0 : index
    %c0_2 = arith.constant 0 : index
    %2 = vector.load %arg2[%c0_1, %c0_2] : memref<128x256xbf16, #tpu.memory_space<vmem>>, vector<128x256xbf16>
    %cst = arith.constant dense<0.000000e+00> : vector<8x256xf32>
    %3 = tpu.matmul %1, %2, %cst {dimension_numbers = #tpu.dot_dimension_numbers<[1], [0], [0], [1], [0, 0, 1, 1], [], []>} : vector<8x128xbf16>, vector<128x256xbf16>, vector<8x256xf32> -> vector<8x256xf32>
    %c0_3 = arith.constant 0 : index
    %c0_4 = arith.constant 0 : index
    %4 = vector.load %arg3[%c0_3, %c0_4] : memref<1x256xf32, #tpu.memory_space<vmem>>, vector<1x256xf32>
    %5 = vector.broadcast %4 : vector<1x256xf32> to vector<8x256xf32>
    %6 = arith.addf %3, %5 : vector<8x256xf32>
    %cst_5 = arith.constant 0.000000e+00 : f32
    %7 = vector.broadcast %cst_5 : f32 to vector<8x256xf32>
    %8 = arith.maximumf %6, %7 : vector<8x256xf32>
    %9 = arith.truncf %8 : vector<8x256xf32> to vector<8x256xbf16>
    %c0_6 = arith.constant 0 : index
    %c0_7 = arith.constant 0 : index
    %10 = vector.load %arg4[%c0_6, %c0_7] : memref<256x384xbf16, #tpu.memory_space<vmem>>, vector<256x384xbf16>
    %cst_8 = arith.constant dense<0.000000e+00> : vector<8x384xf32>
    %11 = tpu.matmul %9, %10, %cst_8 {dimension_numbers = #tpu.dot_dimension_numbers<[1], [0], [0], [1], [0, 0, 1, 1], [], []>} : vector<8x256xbf16>, vector<256x384xbf16>, vector<8x384xf32> -> vector<8x384xf32>
    %c0_9 = arith.constant 0 : index
    %c0_10 = arith.constant 0 : index
    %12 = vector.load %arg5[%c0_9, %c0_10] : memref<1x384xf32, #tpu.memory_space<vmem>>, vector<1x384xf32>
    %13 = vector.broadcast %12 : vector<1x384xf32> to vector<8x384xf32>
    %14 = arith.addf %11, %13 : vector<8x384xf32>
    %cst_11 = arith.constant 0.000000e+00 : f32
    %15 = vector.broadcast %cst_11 : f32 to vector<8x384xf32>
    %16 = arith.maximumf %14, %15 : vector<8x384xf32>
    %17 = arith.truncf %16 : vector<8x384xf32> to vector<8x384xbf16>
    %c0_12 = arith.constant 0 : index
    %c0_13 = arith.constant 0 : index
    %18 = vector.load %arg6[%c0_12, %c0_13] : memref<384x896xbf16, #tpu.memory_space<vmem>>, vector<384x896xbf16>
    %cst_14 = arith.constant dense<0.000000e+00> : vector<8x896xf32>
    %19 = tpu.matmul %17, %18, %cst_14 {dimension_numbers = #tpu.dot_dimension_numbers<[1], [0], [0], [1], [0, 0, 1, 1], [], []>} : vector<8x384xbf16>, vector<384x896xbf16>, vector<8x896xf32> -> vector<8x896xf32>
    %c0_15 = arith.constant 0 : index
    %c0_16 = arith.constant 0 : index
    %20 = vector.load %arg7[%c0_15, %c0_16] : memref<1x896xf32, #tpu.memory_space<vmem>>, vector<1x896xf32>
    %21 = vector.broadcast %20 : vector<1x896xf32> to vector<8x896xf32>
    %22 = arith.addf %19, %21 : vector<8x896xf32>
    %23 = math.tanh %22 : vector<8x896xf32>
    %c0_17 = arith.constant 0 : index
    %c0_18 = arith.constant 0 : index
    %24 = vector.load %arg8[%c0_17, %c0_18] : memref<8x896xf32, #tpu.memory_space<vmem>>, vector<8x896xf32>
    tpu.vector_store %arg8[%c0_17, %c0_18], %23 {strides = array<i32>} : memref<8x896xf32, #tpu.memory_space<vmem>>, vector<8x896xf32>,
    return
  }
  func.func @transform_0(%arg0: i32) -> (i32, i32) {
    %c0_i32 = arith.constant 0 : i32
    %c0_i32_0 = arith.constant 0 : i32
    return %arg0, %c0_i32 : i32, i32
  }
  func.func @transform_1(%arg0: i32) -> (i32, i32) {
    %c0_i32 = arith.constant 0 : i32
    %c0_i32_0 = arith.constant 0 : i32
    %c0_i32_1 = arith.constant 0 : i32
    return %c0_i32, %c0_i32_0 : i32, i32
  }
  func.func @transform_2(%arg0: i32) -> (i32, i32) {
    %c0_i32 = arith.constant 0 : i32
    %c0_i32_0 = arith.constant 0 : i32
    %c0_i32_1 = arith.constant 0 : i32
    return %c0_i32, %c0_i32_0 : i32, i32
  }
  func.func @transform_3(%arg0: i32) -> (i32, i32) {
    %c0_i32 = arith.constant 0 : i32
    %c0_i32_0 = arith.constant 0 : i32
    %c0_i32_1 = arith.constant 0 : i32
    return %c0_i32, %c0_i32_0 : i32, i32
  }
  func.func @transform_4(%arg0: i32) -> (i32, i32) {
    %c0_i32 = arith.constant 0 : i32
    %c0_i32_0 = arith.constant 0 : i32
    %c0_i32_1 = arith.constant 0 : i32
    return %c0_i32, %c0_i32_0 : i32, i32
  }
  func.func @transform_5(%arg0: i32) -> (i32, i32) {
    %c0_i32 = arith.constant 0 : i32
    %c0_i32_0 = arith.constant 0 : i32
    %c0_i32_1 = arith.constant 0 : i32
    return %c0_i32, %c0_i32_0 : i32, i32
  }
  func.func @transform_6(%arg0: i32) -> (i32, i32) {
    %c0_i32 = arith.constant 0 : i32
    %c0_i32_0 = arith.constant 0 : i32
    %c0_i32_1 = arith.constant 0 : i32
    return %c0_i32, %c0_i32_0 : i32, i32
  }
  func.func @transform_7(%arg0: i32) -> (i32, i32) {
    %c0_i32 = arith.constant 0 : i32
    %c0_i32_0 = arith.constant 0 : i32
    return %arg0, %c0_i32 : i32, i32
  }
}

</mosaic_0001>

<bundles_post_ra>
// kernel: tpu_custom_call.1
= control target key start
LH: loop header
LB: loop body
LE: loop exit
PB: predicated region body
PF: predicated region fallthrough
CT: control target
= control target key end

     0   :  { %12 = vsyncpa [#allocation3], 0  ;;  %s3083_s0 = inlined_call_operand.hbm [shape: f32[8,128], index: 0, kind: input, shape index: {}]   ;;  %s3084_s1 = inlined_call_operand.hbm [shape: bf16[128,256], index: 1, kind: input, shape index: {}]   ;;  %s3085_s2 = inlined_call_operand.vmem [shape: f32[1,256], index: 2, kind: input, shape index: {}]   ;;  %s3086_s3 = inlined_call_operand.hbm [shape: bf16[256,384], index: 3, kind: input, shape index: {}]   ;;  %s3087_s4 = inlined_call_operand.vmem [shape: f32[1,384], index: 4, kind: input, shape index: {}]   ;;  %s3088_s5 = inlined_call_operand.hbm [shape: bf16[384,896], index: 5, kind: input, shape index: {}]   ;;  %s3089_s6 = inlined_call_operand.vmem [shape: f32[1,896], index: 6, kind: input, shape index: {}]   ;;  %s3090_s7 = inlined_call_operand.hbm [shape: f32[8,896], index: 7, kind: output, shape index: {}]  }
   0x1   :  { %13 = vsyncpa [#allocation6], 0 }
   0x2   :  { %14 = vsyncpa [#allocation9], 0 }
   0x3   :  { %15 = vsyncpa [#allocation4], 0  ;;  %s2907_s24 = smov [#allocation5]   ;;  %s2789_s28 = scalar_lea.hbm %s3084_s1, 2048 }
   0x4   :  { %s31_s25 = sshll.u32 %s2907_s24, 4  ;;  %p2790_p0 = scmp.ne.s32.totalorder %s3084_s1, %s2789_s28  ;;  %s32_s25 = int_to_ptr.vmem [resolvable:$true] %s31_s25 }
   0x5   :  { %p2793_p1 = scmp.lt.u32.totalorder %s2789_s28, %s3084_s1 }
   0x7   :  { %p2795_p2 = pnand %p2793_p1, %p2790_p0 }
   0x9   :  { %2798 = shalt.err (!%p2795_p2)
}
   0xa   :  { %s2799_s10 = scalar_lea.vmem %s32_s25, 2048  ;;  %p2804_p4 = scmp.lt.s32.totalorder %s32_s25, %s32_s25 }
   0xb   :  { %p2800_p3 = scmp.ne.s32.totalorder %s32_s25, %s2799_s10  ;;  %p2805_p5 = scmp.lt.s32.totalorder %s2799_s10, %s2799_s10 }
   0xd   :  { %p2806_p6 = por %p2805_p5, %p2804_p4 }
   0xf   :  { %p2807_p7 = pnand %p2806_p6, %p2800_p3 }
  0x11   :  { %2810 = shalt.err (!%p2807_p7)
}
  0x12   :  { %s2908_s11 = smov 128   ;;  %s2909_s12 = smov 8  }
  0x13   :  { %37 = dma.hbm_to_vmem [thread:$0]  %s3084_s1, 2048, %s32_s25, [#allocation6], %s2908_s11, %s2908_s11, %s2909_s12  }
  0x14   :  { %s2910_s15 = smov [#allocation2]   ;;  %s2911_s17 = smov [#allocation7]  }
  0x15   :  { %s22_s16 = sshll.u32 %s2910_s15, 4  ;;  %s45_s18 = sshll.u32 %s2911_s17, 4  ;;  %s23_s16 = int_to_ptr.vmem [resolvable:$true] %s22_s16  ;;  %s46_s18 = int_to_ptr.vmem [resolvable:$true] %s45_s18 }
  0x16   :  { %s2811_s21 = scalar_lea.hbm %s3083_s0, 128 }
  0x17   :  { %p2812_p8 = scmp.ne.s32.totalorder %s3083_s0, %s2811_s21  ;;  %p2815_p9 = scmp.lt.u32.totalorder %s2811_s21, %s3083_s0 }
  0x19   :  { %p2817_p10 = pnand %p2815_p9, %p2812_p8 }
  0x1b   :  { %2820 = shalt.err (!%p2817_p10)
}
  0x1c   :  { %s2821_s1 = scalar_lea.vmem %s23_s16, 128  ;;  %p2826_p12 = scmp.lt.s32.totalorder %s23_s16, %s23_s16 }
  0x1d   :  { %p2822_p11 = scmp.ne.s32.totalorder %s23_s16, %s2821_s1  ;;  %p2827_p13 = scmp.lt.s32.totalorder %s2821_s1, %s2821_s1 }
  0x1f   :  { %p2828_p0 = por %p2827_p13, %p2826_p12 }
  0x21   :  { %p2829_p1 = pnand %p2828_p0, %p2822_p11 }
  0x23   :  { %2832 = shalt.err (!%p2829_p1)
}
  0x24   :  { %25 = dma.hbm_to_vmem [thread:$0]  %s3083_s0, 128, %s23_s16, [#allocation3]  }
  0x25   :  { %s2833_s30 = scalar_lea.hbm %s3086_s3, 6144 }
  0x26   :  { %p2834_p2 = scmp.ne.s32.totalorder %s3086_s3, %s2833_s30  ;;  %p2837_p3 = scmp.lt.u32.totalorder %s2833_s30, %s3086_s3 }
  0x28   :  { %p2839_p4 = pnand %p2837_p3, %p2834_p2 }
  0x2a   :  { %2842 = shalt.err (!%p2839_p4)
}
  0x2b   :  { %s2843_s12 = scalar_lea.vmem %s46_s18, 6144  ;;  %p2848_p6 = scmp.lt.s32.totalorder %s46_s18, %s46_s18 }
  0x2c   :  { %p2844_p5 = scmp.ne.s32.totalorder %s46_s18, %s2843_s12  ;;  %p2849_p7 = scmp.lt.s32.totalorder %s2843_s12, %s2843_s12 }
  0x2e   :  { %p2850_p8 = por %p2849_p7, %p2848_p6 }
  0x30   :  { %p2851_p9 = pnand %p2850_p8, %p2844_p5 }
  0x32   :  { %2854 = shalt.err (!%p2851_p9)
}
  0x33   :  { %s2912_s0 = smov 192   ;;  %s2913_s13 = smov 12  }
  0x34   :  { %51 = dma.hbm_to_vmem [thread:$0]  %s3086_s3, 6144, %s46_s18, [#allocation6], %s2912_s0, %s2912_s0, %s2913_s13  }
  0x35   :  { %s2914_s16 = smov [#allocation8]   ;;  %s2855_s21 = scalar_lea.hbm %s3088_s5, 21504 }
  0x36   :  { %s59_s17 = sshll.u32 %s2914_s16, 4  ;;  %p2856_p10 = scmp.ne.s32.totalorder %s3088_s5, %s2855_s21  ;;  %s60_s17 = int_to_ptr.vmem [resolvable:$true] %s59_s17 }
  0x37   :  { %p2859_p11 = scmp.lt.u32.totalorder %s2855_s21, %s3088_s5 }
  0x39   :  { %p2861_p12 = pnand %p2859_p11, %p2856_p10 }
  0x3b   :  { %2864 = shalt.err (!%p2861_p12)
}
  0x3c   :  { %s2865_s1 = scalar_lea.vmem %s60_s17, 21504  ;;  %p2870_p0 = scmp.lt.s32.totalorder %s60_s17, %s60_s17 }
  0x3d   :  { %p2866_p13 = scmp.ne.s32.totalorder %s60_s17, %s2865_s1  ;;  %p2871_p1 = scmp.lt.s32.totalorder %s2865_s1, %s2865_s1 }
  0x3f   :  { %p2872_p2 = por %p2871_p1, %p2870_p0 }
  0x41   :  { %p2873_p3 = pnand %p2872_p2, %p2866_p13 }
  0x43   :  { %2876 = shalt.err (!%p2873_p3)
}
  0x44   :  { %s2915_s3 = smov 448   ;;  %s2916_s18 = smov 28  }
  0x45   :  { %65 = dma.hbm_to_vmem [thread:$0]  %s3088_s5, 21504, %s60_s17, [#allocation9], %s2915_s3, %s2915_s3, %s2916_s18  }
  0x46   :  { %2899 = dma.done.wait [#allocation3], 128  }
  0x47   :  { %2900 = vsyncadd [#allocation3], 4294967168 }
  0x48   :  { %2901 = dma.done.wait [#allocation6], 8192  }
  0x49   :  { %2902 = vsyncadd [#allocation6], 4294959104 }
  0x4a   :  { %2903 = dma.done.wait [#allocation9], 21504  }
  0x4b   :  { %2904 = vsyncadd [#allocation9], 4294945792  ;;  %v2917_v0 = vmov 0   ;;  %v2447_v1 = vld [vmem:[#allocation5 + $0x4] ss:$8 sps:$4 sm:$0xff]   ;;  %v81_v26 = vld [vmem:[#allocation2] sm:$0xff] }
  0x4c   :  { %223 = vmatprep.mubr.bf16.mxu0 %v2917_v0  ;;  %v2449_v2 = vld [vmem:[#allocation5] ss:$8 sps:$4 sm:$0xff]   ;;  %191 = vmatprep.subr.bf16.mxu0 %v2447_v1  ;;  %v2450_v3 = vld [vmem:[#allocation5 + $0x14] ss:$8 sps:$4 sm:$0xff]   ;;  %v2452_v4 = vld [vmem:[#allocation5 + $0x10] ss:$8 sps:$4 sm:$0xff]   ;;  %v82_v30 = vpack.c.bf16 %v81_v26, %v81_v26 }
  0x4d   :  { %192 = vmatpush1.bf16.msra.mxu0 %v2449_v2  ;;  %v2453_v5 = vld [vmem:[#allocation5 + $0x24] ss:$8 sps:$4 sm:$0xff]   ;;  %v2455_v6 = vld [vmem:[#allocation5 + $0x20] ss:$8 sps:$4 sm:$0xff]   ;;  %v2456_v7 = vld [vmem:[#allocation5 + $0x34] ss:$8 sps:$4 sm:$0xff]  }
  0x4e   :  { %193 = vmatprep.subr.bf16.mxu0 %v2450_v3  ;;  %v2458_v8 = vld [vmem:[#allocation5 + $0x30] ss:$8 sps:$4 sm:$0xff]   ;;  %v2459_v9 = vld [vmem:[#allocation5 + $0x44] ss:$8 sps:$4 sm:$0xff]   ;;  %v2474_v12 = vld [vmem:[#allocation7 + $0x1c] ss:$12 sps:$4 sm:$0xff]  }
  0x4f   :  { %v2471_v10 = vld [vmem:[#allocation7 + $0x4] ss:$12 sps:$4 sm:$0xff]   ;;  %v2473_v11 = vld [vmem:[#allocation7] ss:$12 sps:$4 sm:$0xff]   ;;  %v2462_v16 = vld [vmem:[#allocation5 + $0x54] ss:$8 sps:$4 sm:$0xff]  }
  0x50   :  { %573 = vmatprep.subr.bf16.mxu1 %v2471_v10  ;;  %v2461_v13 = vld [vmem:[#allocation5 + $0x40] ss:$8 sps:$4 sm:$0xff]   ;;  %v2476_v14 = vld [vmem:[#allocation7 + $0x18] ss:$12 sps:$4 sm:$0xff]   ;;  %v2479_v18 = vld [vmem:[#allocation7 + $0x30] ss:$12 sps:$4 sm:$0xff]  }
  0x51   :  { %194 = vmatpush1.bf16.msra.mxu0 %v2452_v4  ;;  %574 = vmatpush1.bf16.msra.mxu1 %v2473_v11  ;;  %v2477_v15 = vld [vmem:[#allocation7 + $0x34] ss:$12 sps:$4 sm:$0xff]   ;;  %v2464_v17 = vld [vmem:[#allocation5 + $0x50] ss:$8 sps:$4 sm:$0xff]   ;;  %v2465_v20 = vld [vmem:[#allocation5 + $0x64] ss:$8 sps:$4 sm:$0xff]  }
  0x52   :  { %195 = vmatprep.subr.bf16.mxu0 %v2453_v5  ;;  %575 = vmatprep.subr.bf16.mxu1 %v2474_v12  ;;  %v2480_v19 = vld [vmem:[#allocation7 + $0x4c] ss:$12 sps:$4 sm:$0xff]   ;;  %v2482_v21 = vld [vmem:[#allocation7 + $0x48] ss:$12 sps:$4 sm:$0xff]   ;;  %v2483_v23 = vld [vmem:[#allocation7 + $0x64] ss:$12 sps:$4 sm:$0xff]  }
  0x53   :  { %v2467_v22 = vld [vmem:[#allocation5 + $0x60] ss:$8 sps:$4 sm:$0xff]   ;;  %v2468_v24 = vld [vmem:[#allocation5 + $0x74] ss:$8 sps:$4 sm:$0xff]   ;;  %v2470_v25 = vld [vmem:[#allocation5 + $0x70] ss:$8 sps:$4 sm:$0xff]  }
  0x54   :  { %v2485_v27 = vld [vmem:[#allocation7 + $0x60] ss:$12 sps:$4 sm:$0xff]   ;;  %v2486_v28 = vld [vmem:[#allocation7 + $0x7c] ss:$12 sps:$4 sm:$0xff]   ;;  %v2488_v31 = vld [vmem:[#allocation7 + $0x78] ss:$12 sps:$4 sm:$0xff]  }
  0x55   :  { %196 = vmatpush1.bf16.msra.mxu0 %v2455_v6  ;;  %576 = vmatpush1.bf16.msra.mxu1 %v2476_v14  ;;  %v2497_v29 = vld [vmem:[#allocation7 + $0xc8] ss:$12 sps:$4 sm:$0xff]   ;;  %v2502_v34 = vld [vmem:[#allocation7 + $0xe0] ss:$12 sps:$4 sm:$0xff]   ;;  %v2491_v35 = vld [vmem:[#allocation7 + $0x90] ss:$12 sps:$4 sm:$0xff]   ;;  %v101_v6 = vlaneseq }
  0x56   :  { %197 = vmatprep.subr.bf16.mxu0 %v2456_v7  ;;  %577 = vmatprep.subr.bf16.mxu1 %v2477_v15  ;;  %v2489_v32 = vld [vmem:[#allocation7 + $0x94] ss:$12 sps:$4 sm:$0xff]   ;;  %v2492_v36 = vld [vmem:[#allocation7 + $0xac] ss:$12 sps:$4 sm:$0xff]   ;;  %v2495_v40 = vld [vmem:[#allocation7 + $0xc4] ss:$12 sps:$4 sm:$0xff]  }
  0x57   :  { %v2499_v33 = vld [vmem:[#allocation7 + $0x8] ss:$12 sps:$4 sm:$0xff]   ;;  %v2504_v37 = vld [vmem:[#allocation7 + $0x20] ss:$12 sps:$4 sm:$0xff]   ;;  %v2507_v38 = vld [vmem:[#allocation7 + $0xf8] ss:$12 sps:$4 sm:$0xff]  }
  0x58   :  { %v2494_v39 = vld [vmem:[#allocation7 + $0xa8] ss:$12 sps:$4 sm:$0xff]   ;;  %v2509_v41 = vld [vmem:[#allocation7 + $0x38] ss:$12 sps:$4 sm:$0xff]   ;;  %v2498_v42 = vld [vmem:[#allocation7 + $0xc0] ss:$12 sps:$4 sm:$0xff]  }
  0x59   :  { %198 = vmatpush1.bf16.msra.mxu0 %v2458_v8  ;;  %578 = vmatpush1.bf16.msra.mxu1 %v2479_v18  ;;  %v2512_v43 = vld [vmem:[#allocation7 + $0x110] ss:$12 sps:$4 sm:$0xff]   ;;  %v2517_v46 = vld [vmem:[#allocation7 + $0x128] ss:$12 sps:$4 sm:$0xff]   ;;  %v2503_v47 = vld [vmem:[#allocation7 + $0xd8] ss:$12 sps:$4 sm:$0xff]  }
  0x5a   :  { %199 = vmatprep.subr.bf16.mxu0 %v2459_v9  ;;  %579 = vmatprep.subr.bf16.mxu1 %v2480_v19  ;;  %v2500_v44 = vld [vmem:[#allocation7 + $0xdc] ss:$12 sps:$4 sm:$0xff]   ;;  %v2505_v48 = vld [vmem:[#allocation7 + $0xf4] ss:$12 sps:$4 sm:$0xff]   ;;  %v2510_v52 = vld [vmem:[#allocation7 + $0x10c] ss:$12 sps:$4 sm:$0xff]  }
  0x5b   :  { %v2514_v45 = vld [vmem:[#allocation7 + $0x50] ss:$12 sps:$4 sm:$0xff]   ;;  %v2519_v49 = vld [vmem:[#allocation7 + $0x68] ss:$12 sps:$4 sm:$0xff]   ;;  %v2522_v50 = vld [vmem:[#allocation7 + $0x140] ss:$12 sps:$4 sm:$0xff]  }
  0x5c   :  { %v2508_v51 = vld [vmem:[#allocation7 + $0xf0] ss:$12 sps:$4 sm:$0xff]   ;;  %v2524_v53 = vld [vmem:[#allocation7 + $0x80] ss:$12 sps:$4 sm:$0xff]   ;;  %v2513_v54 = vld [vmem:[#allocation7 + $0x108] ss:$12 sps:$4 sm:$0xff]  }
  0x5d   :  { %200 = vmatpush1.bf16.msra.mxu0 %v2461_v13  ;;  %580 = vmatpush1.bf16.msra.mxu1 %v2482_v21  ;;  %v2515_v55 = vld [vmem:[#allocation7 + $0x124] ss:$12 sps:$4 sm:$0xff]   ;;  %v2518_v56 = vld [vmem:[#allocation7 + $0x120] ss:$12 sps:$4 sm:$0xff]   ;;  %v2520_v57 = vld [vmem:[#allocation7 + $0x13c] ss:$12 sps:$4 sm:$0xff]  }
  0x5e   :  { %201 = vmatprep.subr.bf16.mxu0 %v2462_v16  ;;  %581 = vmatprep.subr.bf16.mxu1 %v2483_v23  ;;  %v2523_v58 = vld [vmem:[#allocation7 + $0x138] ss:$12 sps:$4 sm:$0xff]   ;;  %v2525_v59 = vld [vmem:[#allocation7 + $0x154] ss:$12 sps:$4 sm:$0xff]   ;;  %v2528_v61 = vld [vmem:[#allocation7 + $0x150] ss:$12 sps:$4 sm:$0xff]  }
  0x5f   :  { %v2527_v60 = vld [vmem:[#allocation7 + $0x158] ss:$12 sps:$4 sm:$0xff]   ;;  %v2532_v1 = vld [vmem:[#allocation7 + $0x170] ss:$12 sps:$4 sm:$0xff]   ;;  %v2533_v2 = vld [vmem:[#allocation7 + $0x168] ss:$12 sps:$4 sm:$0xff]  }
  0x60   :  { %v2529_v62 = vld [vmem:[#allocation7 + $0x98] ss:$12 sps:$4 sm:$0xff]   ;;  %v2534_v3 = vld [vmem:[#allocation7 + $0xb0] ss:$12 sps:$4 sm:$0xff]   ;;  %v2540_v5 = vld [vmem:[#allocation8 + $0xc] ss:$28 sps:$4 sm:$0xff]  }
  0x61   :  { %202 = vmatpush1.bf16.msra.mxu0 %v2464_v17  ;;  %582 = vmatpush1.bf16.msra.mxu1 %v2485_v27  ;;  %v2530_v63 = vld [vmem:[#allocation7 + $0x16c] ss:$12 sps:$4 sm:$0xff]   ;;  %v2537_v4 = vld [vmem:[#allocation8 + $0x4] ss:$28 sps:$4 sm:$0xff]   ;;  %v3010_v7 = vshrl.u32 %v101_v6, 7  ;;  %vm2919_vm0 = vmmov 0  }
  0x62   :  { %203 = vmatprep.subr.bf16.mxu0 %v2465_v20  ;;  %583 = vmatprep.subr.bf16.mxu1 %v2486_v28  ;;  %v99_v9 = vld [vmem:[%s3085_s2] sm:$0x3]  ;;  %v2538_v23 = vld [vmem:[#allocation8 + $0x8] ss:$28 sps:$4 sm:$0xff]   ;;  %v2544_v28 = vld [vmem:[#allocation8 + $0x40] ss:$28 sps:$4 sm:$0xff]  }
  0x63   :  { %v3013_v8 = vsub.s32 0, %v3010_v7  ;;  %v3019_v10 = vsub.s32 1, %v3010_v7  ;;  %v2546_v26 = vld [vmem:[#allocation8 + $0x44] ss:$28 sps:$4 sm:$0xff]   ;;  %v2541_v27 = vld [vmem:[#allocation8 + $0x38] ss:$28 sps:$4 sm:$0xff]  }
  0x64   :  { %v2609_v6 = vld [vmem:[#allocation8 + $0x2a4] ss:$28 sps:$4 sm:$0xff]  }
  0x65   :  { %204 = vmatpush1.bf16.msra.mxu0 %v2467_v22  ;;  %584 = vmatpush1.bf16.msra.mxu1 %v2488_v31  ;;  %v104_v11 = vrot.slane %v99_v9, %v3013_v8  ;;  %v108_v12 = vrot.slane %v99_v9, %v3019_v10  ;;  %v2535_v22 = vld [vmem:[#allocation8] ss:$28 sps:$4 sm:$0xff]   ;;  %v2547_v31 = vld [vmem:[#allocation8 + $0x70] ss:$28 sps:$4 sm:$0xff]  }
  0x66   :  { %205 = vmatprep.subr.bf16.mxu0 %v2468_v24  ;;  %585 = vmatprep.subr.bf16.mxu1 %v2489_v32  ;;  %v2550_v32 = vld [vmem:[#allocation8 + $0x78] ss:$28 sps:$4 sm:$0xff]   ;;  %v2612_v9 = vld [vmem:[#allocation8 + $0x2ac] ss:$28 sps:$4 sm:$0xff]  }
  0x69   :  { %206 = vmatpush1.bf16.msra.mxu0 %v2470_v25  ;;  %586 = vmatpush1.bf16.msra.mxu1 %v2491_v35  ;;  %v2543_v25 = vld [vmem:[#allocation8 + $0x3c] ss:$28 sps:$4 sm:$0xff]   ;;  %v2553_v35 = vld [vmem:[#allocation8 + $0xa8] ss:$28 sps:$4 sm:$0xff]  }
  0x6a   :  { %2342 = vmatprep.subr.bf16.mxu0 %v2497_v29  ;;  %587 = vmatprep.subr.bf16.mxu1 %v2492_v36  ;;  %v2549_v29 = vld [vmem:[#allocation8 + $0x74] ss:$28 sps:$4 sm:$0xff]  }
  0x6b   :  { %v2556_v36 = vld [vmem:[#allocation8 + $0xb0] ss:$28 sps:$4 sm:$0xff]  }
  0x6c   :  { %224 = vmatmul.mubr.bf16.vlgmr.msra.gmra.mrb[0].mxu0 %v82_v30  ;;  %v2552_v30 = vld [vmem:[#allocation8 + $0x7c] ss:$28 sps:$4 sm:$0xff]  }
  0x6d   :  { %2343 = vmatpush3.bf16.msra.mxu0 %v2499_v33  ;;  %588 = vmatpush1.bf16.msra.mxu1 %v2494_v39  ;;  %v2555_v33 = vld [vmem:[#allocation8 + $0xac] ss:$28 sps:$4 sm:$0xff]   ;;  %v2559_v39 = vld [vmem:[#allocation8 + $0xe0] ss:$28 sps:$4 sm:$0xff]  }
  0x6e   :  { %2344 = vmatprep.subr.bf16.mxu0 %v2502_v34  ;;  %589 = vmatprep.subr.bf16.mxu1 %v2495_v40  ;;  %v2558_v34 = vld [vmem:[#allocation8 + $0xb4] ss:$28 sps:$4 sm:$0xff]   ;;  %v2562_v40 = vld [vmem:[#allocation8 + $0xe8] ss:$28 sps:$4 sm:$0xff]  }
  0x71   :  { %2345 = vmatpush3.bf16.msra.mxu0 %v2504_v37  ;;  %590 = vmatpush1.bf16.msra.mxu1 %v2498_v42  ;;  %v2561_v37 = vld [vmem:[#allocation8 + $0xe4] ss:$28 sps:$4 sm:$0xff]  }
  0x72   :  { %2346 = vmatprep.subr.bf16.mxu0 %v2507_v38  ;;  %591 = vmatprep.subr.bf16.mxu1 %v2500_v44  ;;  %v2564_v38 = vld [vmem:[#allocation8 + $0xec] ss:$28 sps:$4 sm:$0xff]   ;;  %v2570_v42 = vld [vmem:[#allocation8 + $0x124] ss:$28 sps:$4 sm:$0xff]  }
  0x73   :  { %v2568_v44 = vld [vmem:[#allocation8 + $0x120] ss:$28 sps:$4 sm:$0xff]  }
  0x75   :  { %2347 = vmatpush3.bf16.msra.mxu0 %v2509_v41  ;;  %592 = vmatpush1.bf16.msra.mxu1 %v2503_v47  ;;  %v2567_v41 = vld [vmem:[#allocation8 + $0x11c] ss:$28 sps:$4 sm:$0xff]   ;;  %v2571_v47 = vld [vmem:[#allocation8 + $0x150] ss:$28 sps:$4 sm:$0xff]  }
  0x76   :  { %2348 = vmatprep.subr.bf16.mxu0 %v2512_v43  ;;  %593 = vmatprep.subr.bf16.mxu1 %v2505_v48  ;;  %v2565_v43 = vld [vmem:[#allocation8 + $0x118] ss:$28 sps:$4 sm:$0xff]  }
  0x77   :  { %v2574_v48 = vld [vmem:[#allocation8 + $0x158] ss:$28 sps:$4 sm:$0xff]  }
  0x79   :  { %2349 = vmatpush3.bf16.msra.mxu0 %v2514_v45  ;;  %594 = vmatpush1.bf16.msra.mxu1 %v2508_v51  ;;  %v2573_v45 = vld [vmem:[#allocation8 + $0x154] ss:$28 sps:$4 sm:$0xff]   ;;  %v2577_v51 = vld [vmem:[#allocation8 + $0x188] ss:$28 sps:$4 sm:$0xff]  }
  0x7a   :  { %2350 = vmatprep.subr.bf16.mxu0 %v2517_v46  ;;  %595 = vmatprep.subr.bf16.mxu1 %v2510_v52  ;;  %v2576_v46 = vld [vmem:[#allocation8 + $0x15c] ss:$28 sps:$4 sm:$0xff]   ;;  %v2580_v52 = vld [vmem:[#allocation8 + $0x190] ss:$28 sps:$4 sm:$0xff]  }
  0x7d   :  { %2351 = vmatpush3.bf16.msra.mxu0 %v2519_v49  ;;  %596 = vmatpush1.bf16.msra.mxu1 %v2513_v54  ;;  %v2579_v49 = vld [vmem:[#allocation8 + $0x18c] ss:$28 sps:$4 sm:$0xff]  }
  0x7e   :  { %2352 = vmatprep.subr.bf16.mxu0 %v2522_v50  ;;  %597 = vmatprep.subr.bf16.mxu1 %v2515_v55  ;;  %v2582_v50 = vld [vmem:[#allocation8 + $0x194] ss:$28 sps:$4 sm:$0xff]   ;;  %v2588_v54 = vld [vmem:[#allocation8 + $0x1cc] ss:$28 sps:$4 sm:$0xff]   ;;  %v2583_v55 = vld [vmem:[#allocation8 + $0x1c0] ss:$28 sps:$4 sm:$0xff]  }
  0x81   :  { %2353 = vmatpush3.bf16.msra.mxu0 %v2524_v53  ;;  %598 = vmatpush1.bf16.msra.mxu1 %v2518_v56  ;;  %v2585_v53 = vld [vmem:[#allocation8 + $0x1c4] ss:$28 sps:$4 sm:$0xff]  }
  0x82   :  { %599 = vmatprep.subr.bf16.mxu1 %v2520_v57  ;;  %2354 = vmatprep.subr.bf16.mxu0 %v2527_v60  ;;  %v2586_v56 = vld [vmem:[#allocation8 + $0x1c8] ss:$28 sps:$4 sm:$0xff]   ;;  %v2591_v57 = vld [vmem:[#allocation8 + $0x1fc] ss:$28 sps:$4 sm:$0xff]  }
  0x83   :  { %v2592_v60 = vld [vmem:[#allocation8 + $0x200] ss:$28 sps:$4 sm:$0xff]  }
  0x85   :  { %600 = vmatpush1.bf16.msra.mxu1 %v2523_v58  ;;  %2355 = vmatpush3.bf16.msra.mxu0 %v2529_v62  ;;  %v2594_v58 = vld [vmem:[#allocation8 + $0x204] ss:$28 sps:$4 sm:$0xff]   ;;  %v2600_v62 = vld [vmem:[#allocation8 + $0x23c] ss:$28 sps:$4 sm:$0xff]  }
  0x86   :  { %601 = vmatprep.subr.bf16.mxu1 %v2525_v59  ;;  %2356 = vmatprep.subr.bf16.mxu0 %v2532_v1  ;;  %v2589_v59 = vld [vmem:[#allocation8 + $0x1f8] ss:$28 sps:$4 sm:$0xff]  }
  0x87   :  { %v2598_v1 = vld [vmem:[#allocation8 + $0x238] ss:$28 sps:$4 sm:$0xff]  }
  0x89   :  { %602 = vmatpush1.bf16.msra.mxu1 %v2528_v61  ;;  %2357 = vmatpush3.bf16.msra.mxu0 %v2534_v3  ;;  %v2597_v61 = vld [vmem:[#allocation8 + $0x234] ss:$28 sps:$4 sm:$0xff]  }
  0x8a   :  { %603 = vmatprep.subr.bf16.mxu1 %v2530_v63  ;;  %1753 = vmatprep.subr.bf16.mxu0 %v2537_v4  ;;  %v2595_v63 = vld [vmem:[#allocation8 + $0x230] ss:$28 sps:$4 sm:$0xff]   ;;  %v2601_v4 = vld [vmem:[#allocation8 + $0x268] ss:$28 sps:$4 sm:$0xff]  }
  0x8b   :  { %v2606_v3 = vld [vmem:[#allocation8 + $0x274] ss:$28 sps:$4 sm:$0xff]  }
  0x8d   :  { %604 = vmatpush1.bf16.msra.mxu1 %v2533_v2  ;;  %v2603_v2 = vld [vmem:[#allocation8 + $0x26c] ss:$28 sps:$4 sm:$0xff]  }
  0x8e   :  { %1835 = vmatprep.subr.bf16.mxu1 %v2540_v5  ;;  %v2604_v5 = vld [vmem:[#allocation8 + $0x270] ss:$28 sps:$4 sm:$0xff]  }
 0x13f   :  { %v225_v13 = vpop.f32.mrb[0].mxu0 }
 0x140   :  { %v226_v14 = vadd.f32 %v225_v13, %v104_v11  ;;  %v227_v15 = vpop.f32.mrb[1].mxu0  ;;  %v2607_v11 = vld [vmem:[#allocation8 + $0x2a0] ss:$28 sps:$4 sm:$0xff]  }
 0x141   :  { %v228_v16 = vadd.f32 %v227_v15, %v108_v12  ;;  %v229_v17 = vpop.f32.mrb[2].mxu0  ;;  %v2610_v12 = vld [vmem:[#allocation8 + $0x2a8] ss:$28 sps:$4 sm:$0xff]   ;;  %v2615_v13 = vld [vmem:[#allocation8 + $0x2dc] ss:$28 sps:$4 sm:$0xff]  }
 0x142   :  { %v232_v18 = vmax.f32 %v226_v14, 0.0  ;;  %v230_v19 = vpop.f32.mrb[3].mxu0  ;;  %v2618_v14 = vld [vmem:[#allocation8 + $0x2e4] ss:$28 sps:$4 sm:$0xff]   ;;  %v2613_v15 = vld [vmem:[#allocation8 + $0x2d8] ss:$28 sps:$4 sm:$0xff]  }
 0x143   :  { %v233_v20 = vmax.f32 %v228_v16, 0.0  ;;  %v2616_v16 = vld [vmem:[#allocation8 + $0x2e0] ss:$28 sps:$4 sm:$0xff]   ;;  %v2621_v17 = vld [vmem:[#allocation8 + $0x314] ss:$28 sps:$4 sm:$0xff]  }
 0x144   :  { %v234_v24 = vpack.c.bf16 %v232_v18, %v232_v18  ;;  %v2624_v18 = vld [vmem:[#allocation8 + $0x31c] ss:$28 sps:$4 sm:$0xff]   ;;  %v2619_v19 = vld [vmem:[#allocation8 + $0x310] ss:$28 sps:$4 sm:$0xff]  }
 0x145   :  { %v235_v21 = vpack.c.bf16 %v233_v20, %v233_v20  ;;  %v2622_v20 = vld [vmem:[#allocation8 + $0x318] ss:$28 sps:$4 sm:$0xff]  }
 0x147   :  { %605 = vmatprep.mubr.bf16.mxu1 %v235_v21  ;;  %646 = vmatprep.mubr.bf16.mxu0 %v235_v21  ;;  %v2627_v21 = vld [vmem:[#allocation8 + $0x34c] ss:$28 sps:$4 sm:$0xff]  }
 0x148   :  { %606 = vmatmul.mubr.bf16.vlgmr.msra.gmra.mrb[0].mxu1 %v234_v24  ;;  %647 = vmatmul.mubr.bf16.vlgmr.msra.gmra.mrb[4].mxu0 %v234_v24  ;;  %v2628_v24 = vld [vmem:[#allocation8 + $0x350] ss:$28 sps:$4 sm:$0xff]  }
 0x149   :  { %1754 = vmatpush1.bf16.msra.mxu0 %v2535_v22  ;;  %1836 = vmatpush1.bf16.msra.mxu1 %v2538_v23  ;;  %v2630_v22 = vld [vmem:[#allocation8 + $0x354] ss:$28 sps:$4 sm:$0xff]   ;;  %v2625_v23 = vld [vmem:[#allocation8 + $0x348] ss:$28 sps:$4 sm:$0xff]  }
 0x14a   :  { %1755 = vmatprep.subr.bf16.mxu0 %v2543_v25  ;;  %1837 = vmatprep.subr.bf16.mxu1 %v2546_v26  ;;  %v2633_v25 = vld [vmem:[#allocation8 + $0x384] ss:$28 sps:$4 sm:$0xff]   ;;  %v2636_v26 = vld [vmem:[#allocation8 + $0x38c] ss:$28 sps:$4 sm:$0xff]  }
 0x14d   :  { %1756 = vmatpush1.bf16.msra.mxu0 %v2541_v27  ;;  %1838 = vmatpush1.bf16.msra.mxu1 %v2544_v28  ;;  %v3026_v27 = vld [vmem:[%s3087_s4] sm:$0x7] }
 0x14e   :  { %1757 = vmatprep.subr.bf16.mxu0 %v2549_v29  ;;  %1839 = vmatprep.subr.bf16.mxu1 %v2552_v30  ;;  %v305_v28 = vrot.slane %v3026_v27, %v3013_v8  ;;  %v309_v29 = vrot.slane %v3026_v27, %v3019_v10 }
 0x151   :  { %1758 = vmatpush1.bf16.msra.mxu0 %v2547_v31  ;;  %1840 = vmatpush1.bf16.msra.mxu1 %v2550_v32 }
 0x152   :  { %1759 = vmatprep.subr.bf16.mxu0 %v2555_v33  ;;  %1841 = vmatprep.subr.bf16.mxu1 %v2558_v34 }
 0x155   :  { %1760 = vmatpush1.bf16.msra.mxu0 %v2553_v35  ;;  %1842 = vmatpush1.bf16.msra.mxu1 %v2556_v36 }
 0x156   :  { %1761 = vmatprep.subr.bf16.mxu0 %v2561_v37  ;;  %1843 = vmatprep.subr.bf16.mxu1 %v2564_v38 }
 0x159   :  { %1762 = vmatpush1.bf16.msra.mxu0 %v2559_v39  ;;  %1844 = vmatpush1.bf16.msra.mxu1 %v2562_v40 }
 0x15a   :  { %1763 = vmatprep.subr.bf16.mxu0 %v2567_v41  ;;  %1845 = vmatprep.subr.bf16.mxu1 %v2570_v42 }
 0x15d   :  { %1764 = vmatpush1.bf16.msra.mxu0 %v2565_v43  ;;  %1846 = vmatpush1.bf16.msra.mxu1 %v2568_v44  ;;  %v2631_v44 = vld [vmem:[#allocation8 + $0x380] ss:$28 sps:$4 sm:$0xff]  }
 0x15e   :  { %1765 = vmatprep.subr.bf16.mxu0 %v2573_v45  ;;  %1847 = vmatprep.subr.bf16.mxu1 %v2576_v46  ;;  %v2634_v45 = vld [vmem:[#allocation8 + $0x388] ss:$28 sps:$4 sm:$0xff]  }
 0x161   :  { %1766 = vmatpush1.bf16.msra.mxu0 %v2571_v47  ;;  %1848 = vmatpush1.bf16.msra.mxu1 %v2574_v48  ;;  %v2639_v47 = vld [vmem:[#allocation8 + $0x3bc] ss:$28 sps:$4 sm:$0xff]   ;;  %v2642_v48 = vld [vmem:[#allocation8 + $0x3c4] ss:$28 sps:$4 sm:$0xff]  }
 0x162   :  { %1767 = vmatprep.subr.bf16.mxu0 %v2579_v49  ;;  %1849 = vmatprep.subr.bf16.mxu1 %v2582_v50  ;;  %v2637_v49 = vld [vmem:[#allocation8 + $0x3b8] ss:$28 sps:$4 sm:$0xff]   ;;  %v2640_v50 = vld [vmem:[#allocation8 + $0x3c0] ss:$28 sps:$4 sm:$0xff]  }
 0x165   :  { %1768 = vmatpush1.bf16.msra.mxu0 %v2577_v51  ;;  %1850 = vmatpush1.bf16.msra.mxu1 %v2580_v52  ;;  %v2645_v51 = vld [vmem:[#allocation8 + $0x3f4] ss:$28 sps:$4 sm:$0xff]   ;;  %v2648_v52 = vld [vmem:[#allocation8 + $0x3fc] ss:$28 sps:$4 sm:$0xff]  }
 0x166   :  { %1769 = vmatprep.subr.bf16.mxu0 %v2585_v53  ;;  %1851 = vmatprep.subr.bf16.mxu1 %v2588_v54  ;;  %v2643_v53 = vld [vmem:[#allocation8 + $0x3f0] ss:$28 sps:$4 sm:$0xff]   ;;  %v2646_v54 = vld [vmem:[#allocation8 + $0x3f8] ss:$28 sps:$4 sm:$0xff]  }
 0x169   :  { %1770 = vmatpush1.bf16.msra.mxu0 %v2583_v55  ;;  %1852 = vmatpush1.bf16.msra.mxu1 %v2586_v56  ;;  %v2651_v55 = vld [vmem:[#allocation8 + $0x42c] ss:$28 sps:$4 sm:$0xff]   ;;  %v2654_v56 = vld [vmem:[#allocation8 + $0x434] ss:$28 sps:$4 sm:$0xff]  }
 0x16a   :  { %1771 = vmatprep.subr.bf16.mxu0 %v2591_v57  ;;  %1853 = vmatprep.subr.bf16.mxu1 %v2594_v58  ;;  %v2649_v57 = vld [vmem:[#allocation8 + $0x428] ss:$28 sps:$4 sm:$0xff]   ;;  %v2652_v58 = vld [vmem:[#allocation8 + $0x430] ss:$28 sps:$4 sm:$0xff]  }
 0x16d   :  { %1772 = vmatpush1.bf16.msra.mxu0 %v2589_v59  ;;  %1854 = vmatpush1.bf16.msra.mxu1 %v2592_v60  ;;  %v2657_v59 = vld [vmem:[#allocation8 + $0x464] ss:$28 sps:$4 sm:$0xff]   ;;  %v2660_v60 = vld [vmem:[#allocation8 + $0x46c] ss:$28 sps:$4 sm:$0xff]  }
 0x16e   :  { %1773 = vmatprep.subr.bf16.mxu0 %v2597_v61  ;;  %1855 = vmatprep.subr.bf16.mxu1 %v2600_v62  ;;  %v2655_v61 = vld [vmem:[#allocation8 + $0x460] ss:$28 sps:$4 sm:$0xff]   ;;  %v2658_v62 = vld [vmem:[#allocation8 + $0x468] ss:$28 sps:$4 sm:$0xff]  }
 0x171   :  { %1774 = vmatpush1.bf16.msra.mxu0 %v2595_v63  ;;  %1856 = vmatpush1.bf16.msra.mxu1 %v2598_v1  ;;  %v312_v63 = vsub.s32 2, %v3010_v7  ;;  %v2663_v1 = vld [vmem:[#allocation8 + $0x49c] ss:$28 sps:$4 sm:$0xff]  }
 0x172   :  { %1775 = vmatprep.subr.bf16.mxu0 %v2603_v2  ;;  %1857 = vmatprep.subr.bf16.mxu1 %v2606_v3  ;;  %v2666_v2 = vld [vmem:[#allocation8 + $0x4a4] ss:$28 sps:$4 sm:$0xff]   ;;  %v2661_v3 = vld [vmem:[#allocation8 + $0x498] ss:$28 sps:$4 sm:$0xff]  }
 0x175   :  { %1776 = vmatpush1.bf16.msra.mxu0 %v2601_v4  ;;  %1858 = vmatpush1.bf16.msra.mxu1 %v2604_v5  ;;  %v2664_v4 = vld [vmem:[#allocation8 + $0x4a0] ss:$28 sps:$4 sm:$0xff]   ;;  %v313_v5 = vrot.slane %v3026_v27, %v312_v63  ;;  %v2688_v27 = vld [vmem:[#allocation8 + $0x50] ss:$28 sps:$4 sm:$0xff]  }
 0x176   :  { %1777 = vmatprep.subr.bf16.mxu0 %v2609_v6  ;;  %1859 = vmatprep.subr.bf16.mxu1 %v2612_v9  ;;  %v2669_v6 = vld [vmem:[#allocation8 + $0x4d4] ss:$28 sps:$4 sm:$0xff]   ;;  %v2672_v9 = vld [vmem:[#allocation8 + $0x4dc] ss:$28 sps:$4 sm:$0xff]  }
 0x179   :  { %1778 = vmatpush1.bf16.msra.mxu0 %v2607_v11  ;;  %1860 = vmatpush1.bf16.msra.mxu1 %v2610_v12  ;;  %v2667_v11 = vld [vmem:[#allocation8 + $0x4d0] ss:$28 sps:$4 sm:$0xff]   ;;  %v2670_v12 = vld [vmem:[#allocation8 + $0x4d8] ss:$28 sps:$4 sm:$0xff]  }
 0x17a   :  { %1779 = vmatprep.subr.bf16.mxu0 %v2615_v13  ;;  %1861 = vmatprep.subr.bf16.mxu1 %v2618_v14  ;;  %v2675_v14 = vld [vmem:[#allocation8 + $0x50c] ss:$28 sps:$4 sm:$0xff]  }
 0x17d   :  { %1780 = vmatpush1.bf16.msra.mxu0 %v2613_v15  ;;  %1862 = vmatpush1.bf16.msra.mxu1 %v2616_v16  ;;  %v2678_v15 = vld [vmem:[#allocation8 + $0x514] ss:$28 sps:$4 sm:$0xff]   ;;  %v2673_v16 = vld [vmem:[#allocation8 + $0x508] ss:$28 sps:$4 sm:$0xff]  }
 0x17e   :  { %1781 = vmatprep.subr.bf16.mxu0 %v2621_v17  ;;  %1863 = vmatprep.subr.bf16.mxu1 %v2624_v18  ;;  %v2676_v17 = vld [vmem:[#allocation8 + $0x510] ss:$28 sps:$4 sm:$0xff]  }
 0x181   :  { %1782 = vmatpush1.bf16.msra.mxu0 %v2619_v19  ;;  %1864 = vmatpush1.bf16.msra.mxu1 %v2622_v20  ;;  %v2681_v19 = vld [vmem:[#allocation8 + $0x14] ss:$28 sps:$4 sm:$0xff]  }
 0x182   :  { %1783 = vmatprep.subr.bf16.mxu0 %v2627_v21  ;;  %1865 = vmatprep.subr.bf16.mxu1 %v2630_v22  ;;  %v2682_v20 = vld [vmem:[#allocation8 + $0x1d8] ss:$28 sps:$4 sm:$0xff]   ;;  %v2679_v21 = vld [vmem:[#allocation8 + $0x10] ss:$28 sps:$4 sm:$0xff]  }
 0x185   :  { %1784 = vmatpush1.bf16.msra.mxu0 %v2625_v23  ;;  %1866 = vmatpush1.bf16.msra.mxu1 %v2628_v24  ;;  %v2683_v23 = vld [vmem:[#allocation8 + $0x18] ss:$28 sps:$4 sm:$0xff]   ;;  %v2686_v24 = vld [vmem:[#allocation8 + $0x4c] ss:$28 sps:$4 sm:$0xff]  }
 0x186   :  { %1794 = vmatprep.subr.bf16.mxu0 %v2633_v25  ;;  %1876 = vmatprep.subr.bf16.mxu1 %v2636_v26  ;;  %v2687_v25 = vld [vmem:[#allocation8 + $0x210] ss:$28 sps:$4 sm:$0xff]   ;;  %v2684_v26 = vld [vmem:[#allocation8 + $0x48] ss:$28 sps:$4 sm:$0xff]  }
 0x21b   :  { %v607_v30 = vpop.f32.mrb[0].mxu1  ;;  %v2358_v31 = vpop.f32.mrb[4].mxu0 }
 0x21c   :  { %v608_v32 = vadd.f32 %v607_v30, %v305_v28  ;;  %v609_v33 = vpop.f32.mrb[1].mxu1  ;;  %v2359_v34 = vpop.f32.mrb[5].mxu0  ;;  %v2691_v28 = vld [vmem:[#allocation8 + $0x84] ss:$28 sps:$4 sm:$0xff]  }
 0x21d   :  { %v610_v35 = vadd.f32 %v609_v33, %v309_v29  ;;  %v3032_v36 = vadd.f32 %v2359_v34, %v2358_v31  ;;  %v611_v37 = vpop.f32.mrb[2].mxu1  ;;  %v2361_v38 = vpop.f32.mrb[6].mxu0  ;;  %v2692_v29 = vld [vmem:[#allocation8 + $0x248] ss:$28 sps:$4 sm:$0xff]   ;;  %v2689_v30 = vld [vmem:[#allocation8 + $0x80] ss:$28 sps:$4 sm:$0xff]  }
 0x21e   :  { %v654_v39 = vmax.f32 %v608_v32, 0.0  ;;  %v612_v40 = vpop.f32.mrb[3].mxu1  ;;  %v2362_v41 = vpop.f32.mrb[7].mxu0  ;;  %v2693_v31 = vld [vmem:[#allocation8 + $0x88] ss:$28 sps:$4 sm:$0xff]  }
 0x21f   :  { %v655_v42 = vmax.f32 %v610_v35, 0.0  ;;  %v649_v13 = vadd.f32 %v3032_v36, %v313_v5  ;;  %v2696_v32 = vld [vmem:[#allocation8 + $0xbc] ss:$28 sps:$4 sm:$0xff]   ;;  %v2701_v36 = vld [vmem:[#allocation8 + $0xf4] ss:$28 sps:$4 sm:$0xff]  }
 0x220   :  { %v3036_v46 = vpack.c.bf16 %v654_v39, %v654_v39  ;;  %v2697_v33 = vld [vmem:[#allocation8 + $0x280] ss:$28 sps:$4 sm:$0xff]   ;;  %v2694_v34 = vld [vmem:[#allocation8 + $0xb8] ss:$28 sps:$4 sm:$0xff]   ;;  %v2699_v38 = vld [vmem:[#allocation8 + $0xf0] ss:$28 sps:$4 sm:$0xff]  }
 0x221   :  { %v3034_v43 = vpack.c.bf16 %v655_v42, %v655_v42  ;;  %v656_v18 = vmax.f32 %v649_v13, 0.0  ;;  %v2698_v35 = vld [vmem:[#allocation8 + $0xc0] ss:$28 sps:$4 sm:$0xff]   ;;  %v2702_v37 = vld [vmem:[#allocation8 + $0x2b8] ss:$28 sps:$4 sm:$0xff]  }
 0x222   :  { %v2703_v39 = vld [vmem:[#allocation8 + $0xf8] ss:$28 sps:$4 sm:$0xff]   ;;  %v2706_v40 = vld [vmem:[#allocation8 + $0x12c] ss:$28 sps:$4 sm:$0xff]   ;;  %v2745_v13 = vld [vmem:[#allocation8 + $0x324] ss:$28 sps:$4 sm:$0xff]  }
 0x223   :  { %1785 = vmatprep.mubr.bf16.mxu0 %v3034_v43  ;;  %1867 = vmatprep.mubr.bf16.mxu1 %v3034_v43  ;;  %v3049_v22 = vpack.c.bf16 %v656_v18, %v656_v18  ;;  %v2707_v41 = vld [vmem:[#allocation8 + $0x2f0] ss:$28 sps:$4 sm:$0xff]   ;;  %v2704_v42 = vld [vmem:[#allocation8 + $0x128] ss:$28 sps:$4 sm:$0xff]   ;;  %v2750_v18 = vld [vmem:[#allocation8 + $0x520] ss:$28 sps:$4 sm:$0xff]  }
 0x224   :  { %1786 = vmatmul.mubr.bf16.vlgmr.msra.gmra.mrb[8].mxu0 %v3036_v46  ;;  %1868 = vmatmul.mubr.bf16.vlgmr.msra.gmra.mrb[4].mxu1 %v3036_v46  ;;  %v2735_v5 = vld [vmem:[#allocation8 + $0x2b0] ss:$28 sps:$4 sm:$0xff]  }
 0x225   :  { %1795 = vmatpush1.bf16.msra.mxu0 %v2631_v44  ;;  %1877 = vmatpush1.bf16.msra.mxu1 %v2634_v45  ;;  %v2711_v44 = vld [vmem:[#allocation8 + $0x164] ss:$28 sps:$4 sm:$0xff]  }
 0x226   :  { %1796 = vmatprep.subr.bf16.mxu0 %v2639_v47  ;;  %1878 = vmatprep.subr.bf16.mxu1 %v2642_v48  ;;  %v2712_v45 = vld [vmem:[#allocation8 + $0x328] ss:$28 sps:$4 sm:$0xff]   ;;  %v2709_v47 = vld [vmem:[#allocation8 + $0x160] ss:$28 sps:$4 sm:$0xff]  }
 0x227   :  { %1826 = vmatprep.mubr.bf16.mxu0 %v2917_v0  ;;  %1908 = vmatprep.mubr.bf16.mxu1 %v2917_v0  ;;  %v2713_v48 = vld [vmem:[#allocation8 + $0x168] ss:$28 sps:$4 sm:$0xff]  }
 0x229   :  { %1797 = vmatpush1.bf16.msra.mxu0 %v2637_v49  ;;  %1879 = vmatpush1.bf16.msra.mxu1 %v2640_v50  ;;  %v2716_v49 = vld [vmem:[#allocation8 + $0x19c] ss:$28 sps:$4 sm:$0xff]  }
 0x22a   :  { %1798 = vmatprep.subr.bf16.mxu0 %v2645_v51  ;;  %1880 = vmatprep.subr.bf16.mxu1 %v2648_v52  ;;  %v2717_v50 = vld [vmem:[#allocation8 + $0x360] ss:$28 sps:$4 sm:$0xff]   ;;  %v2714_v51 = vld [vmem:[#allocation8 + $0x198] ss:$28 sps:$4 sm:$0xff]  }
 0x22b   :  { %v2718_v52 = vld [vmem:[#allocation8 + $0x1a0] ss:$28 sps:$4 sm:$0xff]  }
 0x22d   :  { %1799 = vmatpush1.bf16.msra.mxu0 %v2643_v53  ;;  %1881 = vmatpush1.bf16.msra.mxu1 %v2646_v54  ;;  %v2721_v53 = vld [vmem:[#allocation8 + $0x1d4] ss:$28 sps:$4 sm:$0xff]  }
 0x22e   :  { %1800 = vmatprep.subr.bf16.mxu0 %v2651_v55  ;;  %1882 = vmatprep.subr.bf16.mxu1 %v2654_v56  ;;  %v2719_v54 = vld [vmem:[#allocation8 + $0x1d0] ss:$28 sps:$4 sm:$0xff]   ;;  %v2722_v55 = vld [vmem:[#allocation8 + $0x398] ss:$28 sps:$4 sm:$0xff]  }
 0x22f   :  { %v2725_v56 = vld [vmem:[#allocation8 + $0x20c] ss:$28 sps:$4 sm:$0xff]  }
 0x231   :  { %1801 = vmatpush1.bf16.msra.mxu0 %v2649_v57  ;;  %1883 = vmatpush1.bf16.msra.mxu1 %v2652_v58  ;;  %v2918_v57 = vmov 0.0   ;;  %v2723_v58 = vld [vmem:[#allocation8 + $0x208] ss:$28 sps:$4 sm:$0xff]  }
 0x232   :  { %1802 = vmatprep.subr.bf16.mxu0 %v2657_v59  ;;  %1884 = vmatprep.subr.bf16.mxu1 %v2660_v60  ;;  %v2726_v59 = vld [vmem:[#allocation8 + $0x3d0] ss:$28 sps:$4 sm:$0xff]   ;;  %v2729_v60 = vld [vmem:[#allocation8 + $0x244] ss:$28 sps:$4 sm:$0xff]  }
 0x235   :  { %1803 = vmatpush1.bf16.msra.mxu0 %v2655_v61  ;;  %1885 = vmatpush1.bf16.msra.mxu1 %v2658_v62  ;;  %v2727_v61 = vld [vmem:[#allocation8 + $0x240] ss:$28 sps:$4 sm:$0xff]   ;;  %v2730_v62 = vld [vmem:[#allocation8 + $0x408] ss:$28 sps:$4 sm:$0xff]  }
 0x236   :  { %1804 = vmatprep.subr.bf16.mxu0 %v2663_v1  ;;  %1886 = vmatprep.subr.bf16.mxu1 %v2666_v2  ;;  %v2733_v1 = vld [vmem:[#allocation8 + $0x27c] ss:$28 sps:$4 sm:$0xff]  }
 0x237   :  { %v2731_v2 = vld [vmem:[#allocation8 + $0x278] ss:$28 sps:$4 sm:$0xff]  }
 0x239   :  { %1805 = vmatpush1.bf16.msra.mxu0 %v2661_v3  ;;  %1887 = vmatpush1.bf16.msra.mxu1 %v2664_v4  ;;  %v2734_v3 = vld [vmem:[#allocation8 + $0x440] ss:$28 sps:$4 sm:$0xff]   ;;  %v2737_v4 = vld [vmem:[#allocation8 + $0x2b4] ss:$28 sps:$4 sm:$0xff]  }
 0x23a   :  { %1806 = vmatprep.subr.bf16.mxu0 %v2669_v6  ;;  %1888 = vmatprep.subr.bf16.mxu1 %v2672_v9  ;;  %v2738_v6 = vld [vmem:[#allocation8 + $0x478] ss:$28 sps:$4 sm:$0xff]   ;;  %v2741_v9 = vld [vmem:[#allocation8 + $0x2ec] ss:$28 sps:$4 sm:$0xff]  }
 0x23d   :  { %1807 = vmatpush1.bf16.msra.mxu0 %v2667_v11  ;;  %1889 = vmatpush1.bf16.msra.mxu1 %v2670_v12  ;;  %v2739_v11 = vld [vmem:[#allocation8 + $0x2e8] ss:$28 sps:$4 sm:$0xff]   ;;  %v2742_v12 = vld [vmem:[#allocation8 + $0x4b0] ss:$28 sps:$4 sm:$0xff]  }
 0x23e   :  { %1808 = vmatprep.subr.bf16.mxu0 %v2675_v14  ;;  %1890 = vmatprep.subr.bf16.mxu1 %v2678_v15  ;;  %v2743_v14 = vld [vmem:[#allocation8 + $0x320] ss:$28 sps:$4 sm:$0xff]   ;;  %v2746_v15 = vld [vmem:[#allocation8 + $0x4e8] ss:$28 sps:$4 sm:$0xff]  }
 0x241   :  { %1809 = vmatpush1.bf16.msra.mxu0 %v2673_v16  ;;  %1891 = vmatpush1.bf16.msra.mxu1 %v2676_v17  ;;  %v2749_v16 = vld [vmem:[#allocation8 + $0x35c] ss:$28 sps:$4 sm:$0xff]  }
 0x242   :  { %1917 = vmatprep.subr.bf16.mxu0 %v2681_v19  ;;  %2364 = vmatprep.subr.bf16.mxu1 %v2682_v20  ;;  %v2747_v17 = vld [vmem:[#allocation8 + $0x358] ss:$28 sps:$4 sm:$0xff]   ;;  %v2751_v20 = vld [vmem:[#allocation8 + $0x390] ss:$28 sps:$4 sm:$0xff]  }
 0x243   :  { %v2753_v19 = vld [vmem:[#allocation8 + $0x394] ss:$28 sps:$4 sm:$0xff]  }
 0x244   :  { %1827 = vmatmul.mubr.bf16.vlgmr.msra.gmra.mrb[8].mxu0 %v3049_v22  ;;  %1909 = vmatmul.mubr.bf16.vlgmr.msra.gmra.mrb[4].mxu1 %v3049_v22 }
 0x245   :  { %1918 = vmatpush1.bf16.msra.mxu0 %v2679_v21  ;;  %1949 = vmatprep.mubr.bf16.mxu0 %v3034_v43  ;;  %v2756_v21 = vld [vmem:[#allocation8 + $0x3cc] ss:$28 sps:$4 sm:$0xff]  }
 0x246   :  { %2365 = vmatpush3.bf16.msra.mxu1 %v2683_v23  ;;  %2031 = vmatprep.mubr.bf16.mxu1 %v3034_v43  ;;  %v2708_v43 = vld [vmem:[#allocation8 + $0x130] ss:$28 sps:$4 sm:$0xff]   ;;  %v2754_v23 = vld [vmem:[#allocation8 + $0x3c8] ss:$28 sps:$4 sm:$0xff]  }
 0x247   :  { %1919 = vmatprep.subr.bf16.mxu0 %v2686_v24  ;;  %2366 = vmatprep.subr.bf16.mxu1 %v2687_v25  ;;  %v2759_v24 = vld [vmem:[#allocation8 + $0x404] ss:$28 sps:$4 sm:$0xff]  }
 0x248   :  { %v2757_v25 = vld [vmem:[#allocation8 + $0x400] ss:$28 sps:$4 sm:$0xff]  }
 0x249   :  { %1920 = vmatpush1.bf16.msra.mxu0 %v2684_v26  ;;  %v2762_v26 = vld [vmem:[#allocation8 + $0x43c] ss:$28 sps:$4 sm:$0xff]  }
 0x24a   :  { %2367 = vmatpush3.bf16.msra.mxu1 %v2688_v27  ;;  %1921 = vmatprep.subr.bf16.mxu0 %v2691_v28  ;;  %v2760_v27 = vld [vmem:[#allocation8 + $0x438] ss:$28 sps:$4 sm:$0xff]  }
 0x24b   :  { %2368 = vmatprep.subr.bf16.mxu1 %v2692_v29  ;;  %v2765_v28 = vld [vmem:[#allocation8 + $0x474] ss:$28 sps:$4 sm:$0xff]  }
 0x24c   :  { %v2763_v29 = vld [vmem:[#allocation8 + $0x470] ss:$28 sps:$4 sm:$0xff]  }
 0x24d   :  { %1922 = vmatpush1.bf16.msra.mxu0 %v2689_v30  ;;  %v2766_v30 = vld [vmem:[#allocation8 + $0x4a8] ss:$28 sps:$4 sm:$0xff]  }
 0x24e   :  { %2369 = vmatpush3.bf16.msra.mxu1 %v2693_v31  ;;  %1923 = vmatprep.subr.bf16.mxu0 %v2696_v32  ;;  %v2771_v31 = vld [vmem:[#allocation8 + $0x4e4] ss:$28 sps:$4 sm:$0xff]  }
 0x24f   :  { %2370 = vmatprep.subr.bf16.mxu1 %v2697_v33  ;;  %v2769_v32 = vld [vmem:[#allocation8 + $0x4e0] ss:$28 sps:$4 sm:$0xff]   ;;  %v2772_v33 = vld [vmem:[#allocation8 + $0x518] ss:$28 sps:$4 sm:$0xff]  }
 0x251   :  { %1924 = vmatpush1.bf16.msra.mxu0 %v2694_v34  ;;  %v852_v34 = vld [vmem:[%s3089_s6] sm:$0xff]  ;;  %s2920_s6 = smov [#allocation10]  }
 0x252   :  { %2371 = vmatpush3.bf16.msra.mxu1 %v2698_v35  ;;  %1925 = vmatprep.subr.bf16.mxu0 %v2701_v36  ;;  %v868_v35 = vsub.s32 3, %v3010_v7  ;;  %v857_v36 = vrot.slane %v852_v34, %v3013_v8  ;;  %s2099_s8 = sshll.u32 %s2920_s6, 4  ;;  %s2100_s8 = int_to_ptr.vmem [resolvable:$true] %s2099_s8 }
 0x253   :  { %2372 = vmatprep.subr.bf16.mxu1 %v2702_v37  ;;  %v865_v37 = vrot.slane %v852_v34, %v312_v63  ;;  %s2877_s9 = scalar_lea.vmem %s2100_s8, 896  ;;  %p2882_p5 = scmp.lt.s32.totalorder %s2100_s8, %s2100_s8 }
 0x254   :  { %p2878_p4 = scmp.ne.s32.totalorder %s2100_s8, %s2877_s9  ;;  %p2883_p6 = scmp.lt.s32.totalorder %s2877_s9, %s2877_s9 }
 0x255   :  { %1926 = vmatpush1.bf16.msra.mxu0 %v2699_v38  ;;  %v861_v38 = vrot.slane %v852_v34, %v3019_v10 }
 0x256   :  { %2373 = vmatpush3.bf16.msra.mxu1 %v2703_v39  ;;  %1927 = vmatprep.subr.bf16.mxu0 %v2706_v40  ;;  %v869_v39 = vrot.slane %v852_v34, %v868_v35  ;;  %p2884_p7 = por %p2883_p6, %p2882_p5 }
 0x257   :  { %2374 = vmatprep.subr.bf16.mxu1 %v2707_v41 }
 0x258   :  { %p2885_p8 = pnand %p2884_p7, %p2878_p4 }
 0x259   :  { %1928 = vmatpush1.bf16.msra.mxu0 %v2704_v42 }
 0x25a   :  { %2375 = vmatpush3.bf16.msra.mxu1 %v2708_v43  ;;  %1929 = vmatprep.subr.bf16.mxu0 %v2711_v44 }
 0x25b   :  { %2376 = vmatprep.subr.bf16.mxu1 %v2712_v45 }
 0x25d   :  { %1930 = vmatpush1.bf16.msra.mxu0 %v2709_v47 }
 0x25e   :  { %2377 = vmatpush3.bf16.msra.mxu1 %v2713_v48  ;;  %1931 = vmatprep.subr.bf16.mxu0 %v2716_v49 }
 0x25f   :  { %2378 = vmatprep.subr.bf16.mxu1 %v2717_v50 }
 0x261   :  { %1932 = vmatpush1.bf16.msra.mxu0 %v2714_v51 }
 0x262   :  { %2379 = vmatpush3.bf16.msra.mxu1 %v2718_v52  ;;  %1933 = vmatprep.subr.bf16.mxu0 %v2721_v53 }
 0x263   :  { %2395 = vmatprep.subr.bf16.mxu1 %v2918_v57 }
 0x265   :  { %2032 = vmatmul.mubr.bf16.vlgmr.msra.gmra.mrb[8].mxu1 %v3036_v46  ;;  %1934 = vmatpush1.bf16.msra.mxu0 %v2719_v54 }
 0x266   :  { %2396 = vmatpush3.bf16.msra.mxu1 %v2722_v55  ;;  %1935 = vmatprep.subr.bf16.mxu0 %v2725_v56 }
 0x267   :  { %2397 = vmatprep.subr.bf16.mxu1 %v2918_v57  ;;  %2411 = vmatprep.mubr.msk.bf16.mxu1 %vm2919_vm0, %v2918_v57 }
 0x269   :  { %1936 = vmatpush1.bf16.msra.mxu0 %v2723_v58  ;;  %v880_v58 = vsub.s32 6, %v3010_v7 }
 0x26a   :  { %2398 = vmatpush3.bf16.msra.mxu1 %v2726_v59  ;;  %1937 = vmatprep.subr.bf16.mxu0 %v2729_v60 }
 0x26b   :  { %2399 = vmatprep.subr.bf16.mxu1 %v2918_v57  ;;  %v881_v59 = vrot.slane %v852_v34, %v880_v58 }
 0x26d   :  { %1938 = vmatpush1.bf16.msra.mxu0 %v2727_v61 }
 0x26e   :  { %2400 = vmatpush3.bf16.msra.mxu1 %v2730_v62  ;;  %1939 = vmatprep.subr.bf16.mxu0 %v2733_v1 }
 0x26f   :  { %2401 = vmatprep.subr.bf16.mxu1 %v2918_v57 }
 0x271   :  { %1940 = vmatpush1.bf16.msra.mxu0 %v2731_v2 }
 0x272   :  { %2402 = vmatpush3.bf16.msra.mxu1 %v2734_v3  ;;  %1941 = vmatprep.subr.bf16.mxu0 %v2737_v4 }
 0x273   :  { %2403 = vmatprep.subr.bf16.mxu1 %v2918_v57 }
 0x275   :  { %1942 = vmatpush1.bf16.msra.mxu0 %v2735_v5  ;;  %v872_v5 = vsub.s32 4, %v3010_v7 }
 0x276   :  { %2404 = vmatpush3.bf16.msra.mxu1 %v2738_v6  ;;  %1943 = vmatprep.subr.bf16.mxu0 %v2741_v9  ;;  %v876_v6 = vsub.s32 5, %v3010_v7 }
 0x277   :  { %2405 = vmatprep.subr.bf16.mxu1 %v2918_v57  ;;  %v873_v9 = vrot.slane %v852_v34, %v872_v5 }
 0x279   :  { %1944 = vmatpush1.bf16.msra.mxu0 %v2739_v11  ;;  %v877_v11 = vrot.slane %v852_v34, %v876_v6 }
 0x27a   :  { %2406 = vmatpush3.bf16.msra.mxu1 %v2742_v12  ;;  %1945 = vmatprep.subr.bf16.mxu0 %v2745_v13 }
 0x27b   :  { %2407 = vmatprep.subr.bf16.mxu1 %v2918_v57 }
 0x27d   :  { %1946 = vmatpush1.bf16.msra.mxu0 %v2743_v14 }
 0x27e   :  { %2408 = vmatpush3.bf16.msra.mxu1 %v2746_v15  ;;  %1947 = vmatprep.subr.bf16.mxu0 %v2749_v16 }
 0x27f   :  { %2409 = vmatprep.subr.bf16.mxu1 %v2918_v57 }
 0x281   :  { %1948 = vmatpush1.bf16.msra.mxu0 %v2747_v17 }
 0x282   :  { %2410 = vmatpush3.bf16.msra.mxu1 %v2750_v18  ;;  %1958 = vmatprep.subr.bf16.mxu0 %v2753_v19 }
 0x284   :  { %1950 = vmatmul.mubr.bf16.vlgmr.msra.gmra.mrb[12].mxu0 %v3036_v46  ;;  %v2768_v46 = vld [vmem:[#allocation8 + $0x4ac] ss:$28 sps:$4 sm:$0xff]  }
 0x285   :  { %2412 = vmatmul.mubr.bf16.vlgmr.msra.gmra.mrb[12].mxu1 %v3049_v22  ;;  %1959 = vmatpush1.bf16.msra.mxu0 %v2751_v20 }
 0x286   :  { %1960 = vmatprep.subr.bf16.mxu0 %v2756_v21  ;;  %1990 = vmatprep.mubr.bf16.mxu0 %v2917_v0  ;;  %v2774_v0 = vld [vmem:[#allocation8 + $0x51c] ss:$28 sps:$4 sm:$0xff]  }
 0x289   :  { %1961 = vmatpush1.bf16.msra.mxu0 %v2754_v23 }
 0x28a   :  { %1962 = vmatprep.subr.bf16.mxu0 %v2759_v24 }
 0x28d   :  { %1963 = vmatpush1.bf16.msra.mxu0 %v2757_v25 }
 0x28e   :  { %1964 = vmatprep.subr.bf16.mxu0 %v2762_v26 }
 0x291   :  { %1965 = vmatpush1.bf16.msra.mxu0 %v2760_v27 }
 0x292   :  { %1966 = vmatprep.subr.bf16.mxu0 %v2765_v28 }
 0x295   :  { %1967 = vmatpush1.bf16.msra.mxu0 %v2763_v29 }
 0x296   :  { %1968 = vmatprep.subr.bf16.mxu0 %v2768_v46 }
 0x299   :  { %1969 = vmatpush1.bf16.msra.mxu0 %v2766_v30 }
 0x29a   :  { %1970 = vmatprep.subr.bf16.mxu0 %v2771_v31 }
 0x29d   :  { %1971 = vmatpush1.bf16.msra.mxu0 %v2769_v32 }
 0x29e   :  { %1972 = vmatprep.subr.bf16.mxu0 %v2774_v0 }
 0x2a1   :  { %1973 = vmatpush1.bf16.msra.mxu0 %v2772_v33 }
 0x2a4   :  { %1991 = vmatmul.mubr.bf16.vlgmr.msra.gmra.mrb[12].mxu0 %v3049_v22 }
 0x317   :  { %v1828_v40 = vpop.f32.mrb[8].mxu0  ;;  %v1910_v41 = vpop.f32.mrb[4].mxu1 }
 0x318   :  { %v2415_v42 = vadd.f32 %v1828_v40, %v857_v36  ;;  %v2417_v43 = vadd.f32 %v1910_v41, %v865_v37  ;;  %v1830_v44 = vpop.f32.mrb[9].mxu0  ;;  %v1912_v22 = vpop.f32.mrb[5].mxu1 }
 0x319   :  { %v2416_v45 = vadd.f32 %v1830_v44, %v861_v38  ;;  %v2418_v47 = vadd.f32 %v1912_v22, %v869_v39  ;;  %v1832_v48 = vpop.f32.mrb[10].mxu0  ;;  %v1914_v49 = vpop.f32.mrb[6].mxu1 }
 0x31a   :  { %2775 = vtanh.f32 %v2415_v42  ;;  %v1833_v50 = vpop.f32.mrb[11].mxu0  ;;  %v1915_v51 = vpop.f32.mrb[7].mxu1 }
 0x31b   :  { %2777 = vtanh.f32 %v2417_v43 }
 0x31c   :  { %2779 = vtanh.f32 %v2416_v45 }
 0x31d   :  { %2781 = vtanh.f32 %v2418_v47 }
 0x324   :  { %v2776_v8 = vpop.eup %2775 }
 0x325   :  { %v2778_v63 = vpop.eup %2777  ;;  %2086 = vst [vmem:[#allocation10] sm:$0xff] %v2776_v8 }
 0x326   :  { %v2780_v10 = vpop.eup %2779  ;;  %2088 = vst [vmem:[#allocation10 + $0x10] sm:$0xff] %v2778_v63 }
 0x327   :  { %v2782_v52 = vpop.eup %2781  ;;  %2087 = vst [vmem:[#allocation10 + $0x8] sm:$0xff] %v2780_v10 }
 0x328   :  { %2089 = vst [vmem:[#allocation10 + $0x18] sm:$0xff] %v2782_v52 }
 0x338   :  { %v2380_v53 = vpop.f32.mrb[8].mxu1 }
 0x339   :  { %v2381_v54 = vpop.f32.mrb[9].mxu1 }
 0x33a   :  { %v2382_v55 = vadd.f32 %v2381_v54, %v2380_v53  ;;  %v2383_v56 = vpop.f32.mrb[10].mxu1 }
 0x33b   :  { %v2384_v57 = vpop.f32.mrb[11].mxu1 }
 0x33c   :  { %v2034_v60 = vadd.f32 %v2382_v55, %v881_v59 }
 0x358   :  { %v2073_v61 = vpop.f32.mrb[12].mxu1 }
 0x359   :  { %v2074_v62 = vadd.f32 %v2073_v61, %v2034_v60  ;;  %v2413_v1 = vpop.f32.mrb[13].mxu1 }
 0x35a   :  { %v2076_v2 = vpop.f32.mrb[14].mxu1 }
 0x35b   :  { %2783 = vtanh.f32 %v2074_v62  ;;  %v2414_v3 = vpop.f32.mrb[15].mxu1 }
 0x365   :  { %v2784_v4 = vpop.eup %2783 }
 0x366   :  { %2092 = vst [vmem:[#allocation10 + $0x30] sm:$0xff] %v2784_v4 }
 0x377   :  { %v1992_v12 = vpop.f32.mrb[12].mxu0 }
 0x378   :  { %v2419_v13 = vadd.f32 %v1992_v12, %v873_v9  ;;  %v1994_v14 = vpop.f32.mrb[13].mxu0 }
 0x379   :  { %v2420_v15 = vadd.f32 %v1994_v14, %v877_v11  ;;  %v1996_v16 = vpop.f32.mrb[14].mxu0 }
 0x37a   :  { %2785 = vtanh.f32 %v2419_v13  ;;  %v1997_v17 = vpop.f32.mrb[15].mxu0 }
 0x37b   :  { %2787 = vtanh.f32 %v2420_v15 }
 0x384   :  { %v2786_v18 = vpop.eup %2785 }
 0x385   :  { %v2788_v19 = vpop.eup %2787  ;;  %2090 = vst [vmem:[#allocation10 + $0x20] sm:$0xff] %v2786_v18 }
 0x386   :  { %2091 = vst [vmem:[#allocation10 + $0x28] sm:$0xff] %v2788_v19 }
 0x387   :  { %2888 = shalt.err (!%p2885_p8)
}
 0x388   :  { %s2889_s12 = scalar_lea.hbm %s3090_s7, 896 }
 0x389   :  { %p2890_p9 = scmp.ne.s32.totalorder %s3090_s7, %s2889_s12  ;;  %p2893_p10 = scmp.lt.u32.totalorder %s2889_s12, %s3090_s7 }
 0x38b   :  { %p2895_p11 = pnand %p2893_p10, %p2890_p9 }
 0x38d   :  { %2898 = shalt.err (!%p2895_p11)
}
 0x38e   :  { %2102 = dma.vmem_to_hbm [thread:$0]  %s2100_s8, 896, %s3090_s7, [#allocation4]  }
 0x38f   :  { %2905 = dma.done.wait [#allocation4], 896  }
 0x390   :  { %2906 = vsyncadd [#allocation4], 4294966400 }
 0x391   :  { %2106 = vsyncpa [#allocation3], 1 }
 0x392   :  { %2107 = vsyncpa [#allocation6], 1 }
 0x393   :  { %2108 = vsyncpa [#allocation9], 1 }
 0x394   :  { %2109 = vsyncpa [#allocation4], 1 }

</bundles_post_ra>
